<compile_context>
chip_gen: v6e
topology: v6e:2x2x1
jax: 0.10.0
libtpu: 0.0.40
codegen_flags: <defaults>
</compile_context>

<pallas_src>
import jax
import jax.numpy as jnp
from jax.experimental import pallas as pl
from jax.experimental.pallas import tpu as pltpu

_LOC_DIM = 4
_BOXES_PER_ROW = 32                 # 32 boxes * 4 coords = 128 lanes
_LANES = _BOXES_PER_ROW * _LOC_DIM  # 128


def _cdiv(a, b):
    return -(-a // b)


def _round_up(a, b):
    return _cdiv(a, b) * b


def _make_frloc_kernel(sigma):
    sigma = float(sigma)
    sigma2 = sigma * sigma
    inv_sigma2 = 1.0 / sigma2
    half_sigma2 = 0.5 * sigma2
    half_inv_sigma2 = 0.5 / sigma2

    def kernel(expand_ref, labels_ref, pred_ref, gt_ref, loss_ref, cnt_ref):
        # expand_ref: (32, 128) bf16 constant, E[b, 4b:4b+4] = 1 (VMEM-resident)
        # labels_ref: (T, 32)  int32 (padded boxes carry -1 -> not counted)
        # pred_ref  : (T, 128) native dtype
        # gt_ref    : (T, 128) native dtype
        # loss_ref  : (1, 1)   f32  SMEM per-block partial loss sum
        # cnt_ref   : (1, 1)   i32  SMEM per-block valid-label count
        labels = labels_ref[...]                               # (T, 32)
        fg = (labels > 0).astype(jnp.bfloat16)                 # per-box fg mask

        # Broadcast per-box mask to per-coordinate lanes with one tiny bf16
        # matmul on the otherwise-idle MXU (no lane shuffles on the VPU/XLU).
        in_weight = jnp.dot(fg, expand_ref[...],
                            preferred_element_type=jnp.float32)  # (T, 128)

        x = pred_ref[...].astype(jnp.float32)
        t = gt_ref[...].astype(jnp.float32)
        diff = in_weight * (x - t)
        abs_diff = jnp.abs(diff)
        y = jnp.where(abs_diff < inv_sigma2,
                      half_sigma2 * diff * diff,
                      abs_diff - half_inv_sigma2)

        loss_ref[0, 0] = jnp.sum(y)
        # f32 reduce is exact here (count <= 32 * tile_rows << 2^24); global
        # accumulation across blocks happens in int32 in the wrapper.
        cnt = jnp.sum((labels >= 0).astype(jnp.float32))
        cnt_ref[0, 0] = cnt.astype(jnp.int32)

    return kernel


def frloc_loss(pred_locs, gt_locs, gt_labels, sigma, *, max_tile_rows=1024):
    """JAX/Pallas equivalent of FRLocLoss.forward (sigma is a static float)."""
    loc_dim = pred_locs.shape[-1]
    assert loc_dim == _LOC_DIM, "lane packing assumes 4 box-regression coords"

    # Native dtype is kept (e.g. bf16) -> half the HBM DMA bytes vs f32 casts.
    x = pred_locs.reshape(-1)                          # (N*4,)
    t = gt_locs.reshape(-1)
    labels = gt_labels.reshape(-1).astype(jnp.int32)   # (N,)
    n_boxes = labels.shape[0]

    # dtype-native sublane multiple: 8 rows for 32-bit, 16 rows for bf16 coords.
    sublane = 16 if pred_locs.dtype == jnp.bfloat16 else 8

    rows = _cdiv(n_boxes, _BOXES_PER_ROW)
    rows_min = _round_up(rows, sublane)
    tile_cap = max(sublane, (int(max_tile_rows) // sublane) * sublane)

    if rows_min <= tile_cap:
        num_blocks = 1
        tile = rows_min
    else:
        # Balance rows across blocks: largest sublane-aligned tile that (nearly)
        # divides rows_min -> minimal dead-row padding / wasted DMA.
        num_blocks = _cdiv(rows_min, tile_cap)
        tile = _round_up(_cdiv(rows_min, num_blocks), sublane)
    rows_pad = tile * num_blocks
    boxes_pad = rows_pad * _BOXES_PER_ROW

    if boxes_pad != n_boxes:                           # skip the pad copy when possible
        pad = boxes_pad - n_boxes
        x = jnp.pad(x, (0, pad * _LOC_DIM))                       # zeros -> 0 loss
        t = jnp.pad(t, (0, pad * _LOC_DIM))
        labels = jnp.pad(labels, (0, pad), constant_values=-1)    # -1 -> not counted

    x = x.reshape(rows_pad, _LANES)
    t = t.reshape(rows_pad, _LANES)
    labels = labels.reshape(rows_pad, _BOXES_PER_ROW)

    # Constant box->lane expansion matrix (built once, outside the grid loop).
    lane = jax.lax.broadcasted_iota(jnp.int32, (_BOXES_PER_ROW, _LANES), 1)
    box = jax.lax.broadcasted_iota(jnp.int32, (_BOXES_PER_ROW, _LANES), 0)
    expand = (lane // _LOC_DIM == box).astype(jnp.bfloat16)        # (32, 128)

    loss_parts, cnt_parts = pl.pallas_call(
        _make_frloc_kernel(sigma),
        out_shape=(jax.ShapeDtypeStruct((num_blocks, 1), jnp.float32),
                   jax.ShapeDtypeStruct((num_blocks, 1), jnp.int32)),
        grid_spec=pltpu.PrefetchScalarGridSpec(
            num_scalar_prefetch=0,
            grid=(num_blocks,),
            in_specs=[
                pl.BlockSpec((_BOXES_PER_ROW, _LANES), lambda i: (0, 0)),  # expand
                pl.BlockSpec((tile, _BOXES_PER_ROW), lambda i: (i, 0)),    # labels
                pl.BlockSpec((tile, _LANES), lambda i: (i, 0)),            # pred
                pl.BlockSpec((tile, _LANES), lambda i: (i, 0)),            # gt
            ],
            out_specs=(
                pl.BlockSpec((1, 1), lambda i: (i, 0), memory_space=pltpu.SMEM),
                pl.BlockSpec((1, 1), lambda i: (i, 0), memory_space=pltpu.SMEM),
            ),
        ),
        compiler_params=pltpu.CompilerParams(
            # Independent per-block partials -> shard the row grid across both
            # TensorCores on v7x (neutral on single-TC v5e/v6e).
            dimension_semantics=("parallel",),
        ),
    )(expand, labels, x, t)

    loss_sum = jnp.sum(loss_parts)
    count = jnp.sum(cnt_parts).astype(jnp.float32)     # exact int32 global count
    return loss_sum / jnp.maximum(count, 1e-9)


def _frloc_loss_ref(pred_locs, gt_locs, gt_labels, sigma):
    """Pure-JAX reference (mirrors the PyTorch code)."""
    x = pred_locs.reshape(-1, pred_locs.shape[-1]).astype(jnp.float32)
    t = gt_locs.reshape(-1, gt_locs.shape[-1]).astype(jnp.float32)
    labels = gt_labels.reshape(-1, 1)
    in_weight = (labels > 0).astype(jnp.float32)
    sigma2 = sigma ** 2
    diff = in_weight * (x - t)
    abs_diff = jnp.abs(diff)
    flag = (abs_diff < 1.0 / sigma2).astype(jnp.float32)
    y = flag * (sigma2 / 2.0) * diff ** 2 + (1.0 - flag) * (abs_diff - 0.5 / sigma2)
    loc_loss = jnp.sum(y)
    denom = jnp.maximum(jnp.sum((labels >= 0).astype(jnp.float32)), 1e-9)
    return loc_loss / denom


if __name__ == "__main__":
    sigma = 3.0

    # 1) Small test (single grid step, exercises row padding: 128 boxes -> 8 rows).
    k1, k2, k3 = jax.random.split(jax.random.PRNGKey(0), 3)
    batch, num_rois = 2, 64
    pred_locs = jax.random.normal(k1, (batch, num_rois, _LOC_DIM), dtype=jnp.float32)
    gt_locs = jax.random.normal(k2, (batch, num_rois, _LOC_DIM), dtype=jnp.float32)
    gt_labels = jax.random.randint(k3, (batch, num_rois), minval=-1, maxval=3,
                                   dtype=jnp.int32)
    out = jax.block_until_ready(frloc_loss(pred_locs, gt_locs, gt_labels, sigma))
    ref = _frloc_loss_ref(pred_locs, gt_locs, gt_labels, sigma)
    assert jnp.allclose(out, ref, rtol=1e-4, atol=1e-5), (out, ref)

    # 2) Multi-block grid (exercises per-block partials + parallel semantics).
    k4, k5, k6 = jax.random.split(jax.random.PRNGKey(1), 3)
    batch2, num_rois2 = 2, 2048   # N=4096 boxes -> 128 rows; tile cap 8 -> 16 blocks
    pred2 = jax.random.normal(k4, (batch2, num_rois2, _LOC_DIM), dtype=jnp.float32)
    gt2 = jax.random.normal(k5, (batch2, num_rois2, _LOC_DIM), dtype=jnp.float32)
    lab2 = jax.random.randint(k6, (batch2, num_rois2), minval=-1, maxval=3,
                              dtype=jnp.int32)
    out2 = jax.block_until_ready(frloc_loss(pred2, gt2, lab2, sigma, max_tile_rows=8))
    ref2 = _frloc_loss_ref(pred2, gt2, lab2, sigma)
    assert jnp.allclose(out2, ref2, rtol=1e-4, atol=1e-5), (out2, ref2)

    # 3) Multi-block with non-dividing tile cap (exercises balanced tiling + pad).
    out3 = jax.block_until_ready(frloc_loss(pred2, gt2, lab2, sigma, max_tile_rows=48))
    assert jnp.allclose(out3, ref2, rtol=1e-4, atol=1e-5), (out3, ref2)

    # 4) bf16 coordinates (exercises 16-sublane tiles + native-dtype DMA path).
    pred_bf = pred_locs.astype(jnp.bfloat16)
    gt_bf = gt_locs.astype(jnp.bfloat16)
    out4 = jax.block_until_ready(frloc_loss(pred_bf, gt_bf, gt_labels, sigma))
    ref4 = _frloc_loss_ref(pred_bf, gt_bf, gt_labels, sigma)
    assert jnp.allclose(out4, ref4, rtol=1e-3, atol=1e-4), (out4, ref4)

    print("KERNEL_OK")
</pallas_src>

<mosaic_0001>
module attributes {stable_mosaic.version = 11 : i64} {
  func.func @kernel(%arg0: i32, %arg1: memref<32x128xbf16, #tpu.memory_space<vmem>>, %arg2: memref<8x32xi32, #tpu.memory_space<vmem>>, %arg3: memref<8x128xf32, #tpu.memory_space<vmem>>, %arg4: memref<8x128xf32, #tpu.memory_space<vmem>>, %arg5: memref<1x1xf32, #tpu.memory_space<smem>>, %arg6: memref<1x1xi32, #tpu.memory_space<smem>>) attributes {dimension_semantics = [#tpu.dimension_semantics<parallel>], iteration_bounds = array<i64: 1>, scalar_prefetch = 0 : i64, scratch_operands = 0 : i64, tpu.core_type = #tpu.core_type<tc>, window_params = [{pipeline_mode = #tpu.pipeline_mode<synchronous>, transform_indices = @transform_0, window_bounds = array<i64: 32, 128>}, {transform_indices = @transform_1, window_bounds = array<i64: 8, 32>}, {transform_indices = @transform_2, window_bounds = array<i64: 8, 128>}, {transform_indices = @transform_3, window_bounds = array<i64: 8, 128>}, {transform_indices = @transform_4, window_bounds = array<i64: 1, 1>}, {transform_indices = @transform_5, window_bounds = array<i64: 1, 1>}]} {
    %c0 = arith.constant 0 : index
    %c0_0 = arith.constant 0 : index
    %0 = vector.load %arg2[%c0, %c0_0] : memref<8x32xi32, #tpu.memory_space<vmem>>, vector<8x32xi32>
    %c0_i32 = arith.constant 0 : i32
    %1 = vector.broadcast %c0_i32 : i32 to vector<8x32xi32>
    %2 = arith.cmpi sgt, %0, %1 : vector<8x32xi32>
    %3 = arith.extui %2 : vector<8x32xi1> to vector<8x32xi32>
    %4 = arith.sitofp %3 : vector<8x32xi32> to vector<8x32xf32>
    %5 = arith.truncf %4 : vector<8x32xf32> to vector<8x32xbf16>
    %c0_1 = arith.constant 0 : index
    %c0_2 = arith.constant 0 : index
    %6 = vector.load %arg1[%c0_1, %c0_2] : memref<32x128xbf16, #tpu.memory_space<vmem>>, vector<32x128xbf16>
    %cst = arith.constant dense<0.000000e+00> : vector<8x128xf32>
    %7 = tpu.matmul %5, %6, %cst {dimension_numbers = #tpu.dot_dimension_numbers<[1], [0], [0], [1], [0, 0, 1, 1], [], []>} : vector<8x32xbf16>, vector<32x128xbf16>, vector<8x128xf32> -> vector<8x128xf32>
    %c0_3 = arith.constant 0 : index
    %c0_4 = arith.constant 0 : index
    %8 = vector.load %arg3[%c0_3, %c0_4] : memref<8x128xf32, #tpu.memory_space<vmem>>, vector<8x128xf32>
    %c0_5 = arith.constant 0 : index
    %c0_6 = arith.constant 0 : index
    %9 = vector.load %arg4[%c0_5, %c0_6] : memref<8x128xf32, #tpu.memory_space<vmem>>, vector<8x128xf32>
    %10 = arith.subf %8, %9 : vector<8x128xf32>
    %11 = arith.mulf %7, %10 : vector<8x128xf32>
    %12 = math.absf %11 : vector<8x128xf32>
    %cst_7 = arith.constant 0.111111112 : f32
    %13 = vector.broadcast %cst_7 : f32 to vector<8x128xf32>
    %14 = arith.cmpf olt, %12, %13 : vector<8x128xf32>
    %cst_8 = arith.constant 4.500000e+00 : f32
    %15 = vector.broadcast %cst_8 : f32 to vector<8x128xf32>
    %16 = arith.mulf %15, %11 : vector<8x128xf32>
    %17 = arith.mulf %16, %11 : vector<8x128xf32>
    %cst_9 = arith.constant 0.055555556 : f32
    %18 = vector.broadcast %cst_9 : f32 to vector<8x128xf32>
    %19 = arith.subf %12, %18 : vector<8x128xf32>
    %20 = arith.select %14, %17, %19 : vector<8x128xi1>, vector<8x128xf32>
    %21 = vector.shape_cast %20 : vector<8x128xf32> to vector<1x8x128xf32>
    %cst_10 = arith.constant dense<0.000000e+00> : vector<1xf32>
    %22 = vector.multi_reduction <add>, %21, %cst_10 [1, 2] : vector<1x8x128xf32> to vector<1xf32>
    %23 = vector.shape_cast %22 : vector<1xf32> to vector<1x1x1xf32>
    %24 = vector.extract %23[0, 0, 0] : f32 from vector<1x1x1xf32>
    %c0_11 = arith.constant 0 : index
    %c0_12 = arith.constant 0 : index
    %25 = memref.load %arg5[%c0_11, %c0_12] : memref<1x1xf32, #tpu.memory_space<smem>>
    memref.store %24, %arg5[%c0_11, %c0_12] : memref<1x1xf32, #tpu.memory_space<smem>>
    %c0_i32_13 = arith.constant 0 : i32
    %26 = vector.broadcast %c0_i32_13 : i32 to vector<8x32xi32>
    %27 = arith.cmpi sge, %0, %26 : vector<8x32xi32>
    %28 = arith.extui %27 : vector<8x32xi1> to vector<8x32xi32>
    %29 = arith.sitofp %28 : vector<8x32xi32> to vector<8x32xf32>
    %30 = vector.shape_cast %29 : vector<8x32xf32> to vector<1x8x32xf32>
    %cst_14 = arith.constant dense<0.000000e+00> : vector<1xf32>
    %31 = vector.multi_reduction <add>, %30, %cst_14 [1, 2] : vector<1x8x32xf32> to vector<1xf32>
    %32 = vector.shape_cast %31 : vector<1xf32> to vector<1x1x1xf32>
    %33 = vector.extract %32[0, 0, 0] : f32 from vector<1x1x1xf32>
    %34 = arith.fptosi %33 : f32 to i32
    %c0_15 = arith.constant 0 : index
    %c0_16 = arith.constant 0 : index
    %35 = memref.load %arg6[%c0_15, %c0_16] : memref<1x1xi32, #tpu.memory_space<smem>>
    memref.store %34, %arg6[%c0_15, %c0_16] : memref<1x1xi32, #tpu.memory_space<smem>>
    return
  }
  func.func @transform_0(%arg0: i32) -> (i32, i32) {
    %c0_i32 = arith.constant 0 : i32
    %c0_i32_0 = arith.constant 0 : i32
    %c0_i32_1 = arith.constant 0 : i32
    return %c0_i32, %c0_i32_0 : i32, i32
  }
  func.func @transform_1(%arg0: i32) -> (i32, i32) {
    %c0_i32 = arith.constant 0 : i32
    %c0_i32_0 = arith.constant 0 : i32
    return %arg0, %c0_i32 : i32, i32
  }
  func.func @transform_2(%arg0: i32) -> (i32, i32) {
    %c0_i32 = arith.constant 0 : i32
    %c0_i32_0 = arith.constant 0 : i32
    return %arg0, %c0_i32 : i32, i32
  }
  func.func @transform_3(%arg0: i32) -> (i32, i32) {
    %c0_i32 = arith.constant 0 : i32
    %c0_i32_0 = arith.constant 0 : i32
    return %arg0, %c0_i32 : i32, i32
  }
  func.func @transform_4(%arg0: i32) -> (i32, i32) {
    %c0_i32 = arith.constant 0 : i32
    %c0_i32_0 = arith.constant 0 : i32
    return %arg0, %c0_i32 : i32, i32
  }
  func.func @transform_5(%arg0: i32) -> (i32, i32) {
    %c0_i32 = arith.constant 0 : i32
    %c0_i32_0 = arith.constant 0 : i32
    return %arg0, %c0_i32 : i32, i32
  }
}

</mosaic_0001>

<bundles_post_ra>
// kernel: tpu_custom_call.1
= control target key start
LH: loop header
LB: loop body
LE: loop exit
PB: predicated region body
PF: predicated region fallthrough
CT: control target
= control target key end

     0   :  { %11 = vsyncpa [#allocation3], 0  ;;  %s405_s0 = inlined_call_operand.hbm [shape: bf16[32,128], index: 0, kind: input, shape index: {}]   ;;  %s406_s1 = inlined_call_operand.hbm [shape: s32[8,32], index: 1, kind: input, shape index: {}]   ;;  %s407_s2 = inlined_call_operand.hbm [shape: f32[8,128], index: 2, kind: input, shape index: {}]   ;;  %s408_s3 = inlined_call_operand.hbm [shape: f32[8,128], index: 3, kind: input, shape index: {}]   ;;  %s409_s4 = inlined_call_operand.hbm [shape: f32[1,1], index: 4, kind: output, shape index: {0}]   ;;  %s410_s5 = inlined_call_operand.hbm [shape: s32[1,1], index: 5, kind: output, shape index: {1}]  }
   0x1   :  { %12 = vsyncpa [#allocation6], 0 }
   0x2   :  { %13 = vsyncpa [#allocation9], 0 }
   0x3   :  { %14 = vsyncpa [#allocation4], 0 }
   0x4   :  { %15 = vsyncpa [#allocation12], 0  ;;  %s345_s18 = smov [#allocation5]   ;;  %s346_s20 = smov [#allocation2]  }
   0x5   :  { %s34_s19 = sshll.u32 %s345_s18, 4  ;;  %s21_s21 = sshll.u32 %s346_s20, 4  ;;  %s35_s19 = int_to_ptr.vmem [resolvable:$true] %s34_s19  ;;  %s22_s21 = int_to_ptr.vmem [resolvable:$true] %s21_s21 }
   0x6   :  { %s247_s22 = scalar_lea.vmem %s35_s19, 128  ;;  %p252_p1 = scmp.lt.s32.totalorder %s35_s19, %s35_s19 }
   0x7   :  { %p248_p0 = scmp.ne.s32.totalorder %s35_s19, %s247_s22  ;;  %p253_p2 = scmp.lt.s32.totalorder %s247_s22, %s247_s22 }
   0x9   :  { %p254_p3 = por %p253_p2, %p252_p1 }
   0xb   :  { %p255_p4 = pnand %p254_p3, %p248_p0 }
   0xd   :  { %258 = shalt.err (!%p255_p4)
}
   0xe   :  { %37 = dma.hbm_to_vmem [thread:$0]  %s406_s1, 128, %s35_s19, [#allocation6]  }
   0xf   :  { %s267_s25 = scalar_lea.vmem %s22_s21, 256  ;;  %p272_p6 = scmp.lt.s32.totalorder %s22_s21, %s22_s21 }
  0x10   :  { %p268_p5 = scmp.ne.s32.totalorder %s22_s21, %s267_s25  ;;  %p273_p7 = scmp.lt.s32.totalorder %s267_s25, %s267_s25 }
  0x12   :  { %p274_p8 = por %p273_p7, %p272_p6 }
  0x14   :  { %p275_p9 = pnand %p274_p8, %p268_p5 }
  0x16   :  { %278 = shalt.err (!%p275_p9)
}
  0x17   :  { %s347_s26 = smov 64   ;;  %s348_s27 = smov 4  }
  0x18   :  { %27 = dma.hbm_to_vmem [thread:$0]  %s405_s0, 256, %s22_s21, [#allocation3], %s347_s26, %s347_s26, %s348_s27  }
  0x19   :  { %s349_s30 = smov [#allocation7]   ;;  %s350_s7 = smov [#allocation8]  }
  0x1a   :  { %s44_s6 = sshll.u32 %s349_s30, 4  ;;  %s54_s8 = sshll.u32 %s350_s7, 4  ;;  %s45_s6 = int_to_ptr.vmem [resolvable:$true] %s44_s6  ;;  %s55_s8 = int_to_ptr.vmem [resolvable:$true] %s54_s8 }
  0x1b   :  { %s287_s1 = scalar_lea.vmem %s45_s6, 128  ;;  %p292_p11 = scmp.lt.s32.totalorder %s45_s6, %s45_s6 }
  0x1c   :  { %p288_p10 = scmp.ne.s32.totalorder %s45_s6, %s287_s1  ;;  %p293_p12 = scmp.lt.s32.totalorder %s287_s1, %s287_s1 }
  0x1e   :  { %p294_p13 = por %p293_p12, %p292_p11 }
  0x20   :  { %p295_p0 = pnand %p294_p13, %p288_p10 }
  0x22   :  { %298 = shalt.err (!%p295_p0)
}
  0x23   :  { %47 = dma.hbm_to_vmem [thread:$0]  %s407_s2, 128, %s45_s6, [#allocation6]  }
  0x24   :  { %s307_s11 = scalar_lea.vmem %s55_s8, 128  ;;  %p312_p2 = scmp.lt.s32.totalorder %s55_s8, %s55_s8 }
  0x25   :  { %p308_p1 = scmp.ne.s32.totalorder %s55_s8, %s307_s11  ;;  %p313_p3 = scmp.lt.s32.totalorder %s307_s11, %s307_s11 }
  0x27   :  { %p314_p4 = por %p313_p3, %p312_p2 }
  0x29   :  { %p315_p5 = pnand %p314_p4, %p308_p1 }
  0x2b   :  { %318 = shalt.err (!%p315_p5)
}
  0x2c   :  { %57 = dma.hbm_to_vmem [thread:$0]  %s408_s3, 128, %s55_s8, [#allocation9]  }
  0x2d   :  { %335 = dma.done.wait [#allocation3], 256  }
  0x2e   :  { %336 = vsyncadd [#allocation3], 4294967040 }
  0x2f   :  { %337 = dma.done.wait [#allocation6], 256  }
  0x30   :  { %338 = vsyncadd [#allocation6], 4294967040 }
  0x31   :  { %339 = dma.done.wait [#allocation9], 128  }
  0x32   :  { %340 = vsyncadd [#allocation9], 4294967168  ;;  %v351_v0 = vmov 0.0   ;;  %vm352_vm0 = vmmov 0   ;;  %v237_v1 = vld [vmem:[#allocation2 + $0x8] sm:$0xff]   ;;  %v238_v2 = vld [vmem:[#allocation2] sm:$0xff]  }
  0x33   :  { %210 = vmatprep.subr.bf16.mxu0 %v351_v0  ;;  %214 = vmatprep.mubr.msk.bf16.mxu0 %vm352_vm0, %v351_v0  ;;  %v71_v3 = vld [vmem:[#allocation5] sm:$0xff]  ;;  %vm92_vm2 = vcmask 261120   ;;  %v136_v6 = vld [vmem:[#allocation7] sm:$0xff]  ;;  %v137_v7 = vld [vmem:[#allocation8] sm:$0xff]  ;;  %s353_s3 = smov [#allocation10]   ;;  %s354_s19 = smov [#allocation11]  }
  0x34   :  { %211 = vmatpush3.bf16.msra.mxu0 %v237_v1  ;;  %vm72_vm1 = vcmp.gt.s32.totalorder %v71_v3, 0  ;;  %v138_v8 = vsub.f32 %v136_v6, %v137_v7  ;;  %vm157_vm3 = vcmp.ge.s32.totalorder %v71_v3, 0 }
  0x35   :  { %212 = vmatprep.subr.bf16.mxu0 %v351_v0  ;;  %v201_v4 = vsel %vm72_vm1, 1.0, %v351_v0  ;;  %v206_v18 = vsel %vm157_vm3, 1.0, %v351_v0 }
  0x36   :  { %v75_v5 = vpack.c.bf16 %v201_v4, %v201_v4  ;;  %v160_v20 = vsel %vm92_vm2, %v206_v18, 0.0 }
  0x38   :  { %213 = vmatpush3.bf16.msra.mxu0 %v238_v2 }
  0x3b   :  { %215 = vmatmul.mubr.msk.bf16.vlgmr.msra.gmra.mxu0 %vm92_vm2, %v75_v5 }
  0xfb   :  { %v130_v9 = vpop.f32.mrf.mxu0 }
  0xfc   :  { %v139_v10 = vmul.f32 %v138_v8, %v130_v9 }
  0xfd   :  { %v216_v11 = vpop.f32.mrf.mxu0 }
  0xfe   :  { %v142_v12 = vmul.f32 4.5, %v139_v10  ;;  %v140_v13 = vand.u32 2147483647, %v139_v10 }
  0xff   :  { %v133_v14 = vpop.f32.mrf.mxu0 }
 0x100   :  { %vm141_vm4 = vcmp.lt.f32.partialorder %v140_v13, 0.11111111  ;;  %v143_v15 = vmul.f32 %v142_v12, %v139_v10  ;;  %v205_v16 = vadd.f32 -0.055555556, %v140_v13 }
 0x101   :  { %v217_v17 = vpop.f32.mrf.mxu0 }
 0x102   :  { %v145_v19 = vsel %vm141_vm4, %v143_v15, %v205_v16 }
 0x103   :  { %146 = vadd.xlane.f32.xlu0 %v145_v19 }
 0x107   :  { %161 = vadd.xlane.f32.xlu0 %v160_v20 }
 0x18c   :  { %v147_v21 = vpop.xlane.xlu0 %146 }
 0x18d   :  { %v148_v22 = vrot.slane %v147_v21, 4 }
 0x18f   :  { %v149_v23 = vadd.f32 %v148_v22, %v147_v21 }
 0x190   :  { %v162_v24 = vpop.xlane.xlu0 %161 }
 0x191   :  { %v150_v25 = vrot.slane %v149_v23, 2  ;;  %v163_v26 = vrot.slane %v162_v24, 4 }
 0x193   :  { %v164_v27 = vadd.f32 %v163_v26, %v162_v24  ;;  %v151_v28 = vadd.f32 %v150_v25, %v149_v23 }
 0x195   :  { %v165_v29 = vrot.slane %v164_v27, 2  ;;  %v152_v30 = vrot.slane %v151_v28, 1 }
 0x197   :  { %v166_v31 = vadd.f32 %v165_v29, %v164_v27  ;;  %v153_v32 = vadd.f32 %v152_v30, %v151_v28 }
 0x199   :  { %218 = vpush %v153_v32  ;;  %v167_v33 = vrot.slane %v166_v31, 1 }
 0x19b   :  { %v168_v34 = vadd.f32 %v167_v33, %v166_v31 }
 0x19d   :  { %220 = vpush %v168_v34 }
 0x1ca   :  { %s219_s2 = spop %218 }
 0x1cb   :  { %156 = sst [smem:[#allocation10]] %s219_s2 }
 0x1cc   :  { %180 = dma.smem_to_hbm %s353_s3, 16, %s409_s4, [#allocation4]  }
 0x1ce   :  { %s221_s15 = spop %220 }
 0x1cf   :  { %p222_p6 = scmp.lt.s32.totalorder %s221_s15, 0  ;;  %s223_s16 = sceil.f32 %s221_s15 }
 0x1d0   :  { %s224_s17 = sfloor.f32 %s221_s15 }
 0x1d1   :  { %s412_s16 = smov (!%p222_p6, %s223_s16), %s224_s17 }
 0x1d2   :  { %s226_s18 = scvt.f32.s32 %s412_s16 }
 0x1d4   :  { %172 = sst [smem:[#allocation11]] %s226_s18 }
 0x1d5   :  { %188 = dma.smem_to_hbm %s354_s19, 16, %s410_s5, [#allocation12]  }
 0x1d6   :  { %341 = dma.done.wait [#allocation4], 16  }
 0x1d7   :  { %342 = vsyncadd [#allocation4], 4294967280 }
 0x1d8   :  { %343 = dma.done.wait [#allocation12], 16  }
 0x1d9   :  { %344 = vsyncadd [#allocation12], 4294967280 }
 0x1da   :  { %195 = sfence }
 0x1db   :  { %196 = vsyncpa [#allocation3], 1 }
 0x1dc   :  { %197 = vsyncpa [#allocation6], 1 }
 0x1dd   :  { %198 = vsyncpa [#allocation9], 1 }
 0x1de   :  { %199 = vsyncpa [#allocation4], 1 }
 0x1df   :  { %200 = vsyncpa [#allocation12], 1 }

</bundles_post_ra>
